<compile_context>
chip_gen: v7x
topology: tpu7x:2x2x1
jax: 0.10.0
libtpu: 0.0.40
codegen_flags: <defaults>
</compile_context>

<pallas_src>
import functools

import jax
import jax.numpy as jnp
from jax.experimental import pallas as pl
from jax.experimental.pallas import tpu as pltpu


def _make_divisible(v, divisor, min_value=None):
    if min_value is None:
        min_value = divisor
    new_v = max(min_value, int(v + divisor / 2) // divisor * divisor)
    if new_v < 0.9 * v:
        new_v += divisor
    return new_v


def _se_kernel(x_ref, w1t_ref, b1_ref, w2_ref, b2_ref, o_ref, *, hw, fold):
    """One batch tile.

    x_ref / o_ref : (Bt, Cg, fold*hw)   activation slab, Cg = C // fold, native dtype
    w1t_ref       : (fold, Cg, hidden)  fc1.weight^T, channel-permuted to (k, cg) order, f32
    b1_ref        : (1, hidden)         fc1.bias, f32
    w2_ref        : (fold, Cg, hidden)  fc2.weight, channel-permuted, f32
    b2_ref        : (fold, Cg, 1)       fc2.bias, channel-permuted, f32
    """
    inv_hw = 1.0 / hw

    # ---- squeeze: per-channel global average pool (f32 accumulation, no f32 slab copy) ----
    pooled = []                                                      # fold x (Bt, Cg, 1)
    for k in range(fold):
        seg = x_ref[:, :, k * hw:(k + 1) * hw]                       # (Bt, Cg, hw), native dtype
        pooled.append(
            jnp.sum(seg, axis=-1, keepdims=True, dtype=jnp.float32) * inv_hw)

    # ---- fc1 + ReLU: broadcast-multiply + sublane reduce (VPU/XLU; MXU intentionally unused) ----
    h = b1_ref[...]                                                  # (1, hidden) f32
    for k in range(fold):
        # (Cg, hidden) * (Bt, Cg, 1) -> (Bt, Cg, hidden) -> reduce over Cg -> (Bt, 1, hidden)
        h = h + jnp.sum(w1t_ref[k] * pooled[k], axis=1, keepdims=True)
    h = jnp.maximum(h, 0.0)                                          # (Bt, 1, hidden)

    # ---- fc2 + h_sigmoid + excite, one 128-lane channel segment at a time ----
    for k in range(fold):
        # (Cg, hidden) * (Bt, 1, hidden) -> reduce over hidden -> (Bt, Cg, 1)
        s = jnp.sum(w2_ref[k] * h, axis=-1, keepdims=True) + b2_ref[k]
        gate = (jnp.clip(s + 3.0, 0.0, 6.0) * (1.0 / 6.0)).astype(o_ref.dtype)
        o_ref[:, :, k * hw:(k + 1) * hw] = x_ref[:, :, k * hw:(k + 1) * hw] * gate


def se_layer(x: jax.Array, w1: jax.Array, b1: jax.Array,
             w2: jax.Array, b2: jax.Array) -> jax.Array:
    """SELayer forward.

    x : (B, C, H, W)
    w1: (hidden, C)  fc1.weight   b1: (hidden,)  fc1.bias
    w2: (C, hidden)  fc2.weight   b2: (C,)       fc2.bias
    """
    B, C, H, W = x.shape
    hidden = w1.shape[0]
    HW = H * W

    # ---- lane-density folding: pack `fold` adjacent channels into one 128-lane row ----
    fold = 1
    if HW < 128 and 128 % HW == 0 and C % (128 // HW) == 0:
        fold = 128 // HW
    Cg = C // fold
    L = fold * HW

    x3 = x.reshape(B, Cg, L)                       # free contiguous reshape, lane-dense last dim

    # Weights: pre-cast to f32 (no per-step cast on resident blocks) and pre-permute the
    # channel axis into folded (k, cg) order: original channel c = cg*fold + k -> slot [k, cg].
    f32 = jnp.float32
    w1t_p = jnp.transpose(w1).astype(f32).reshape(Cg, fold, hidden).transpose(1, 0, 2)
    b1r = b1.astype(f32).reshape(1, hidden)
    w2_p = w2.astype(f32).reshape(Cg, fold, hidden).transpose(1, 0, 2)
    b2_p = b2.astype(f32).reshape(Cg, fold, 1).transpose(1, 0, 2)

    # ---- generation-aware VMEM budget & batch tile ----
    try:
        vmem_cap = int(pltpu.get_tpu_info().vmem_capacity_bytes)
    except Exception:
        vmem_cap = 64 * 1024 * 1024                # assume the smallest (v7x) if query fails
    vmem_limit = min((vmem_cap * 3) // 4, 112 * 1024 * 1024)   # ~48 MiB v7x, ~96 MiB v5e/v6e
    block_cap = vmem_limit // 6                    # 2x in + 2x out pipeline buffers + temps

    itemsize = jnp.dtype(x.dtype).itemsize
    per_image = (-(-Cg // 8) * 8) * (-(-L // 128) * 128) * itemsize   # VMEM-padded bytes/image
    bt = 1
    for cand in range(1, B + 1):
        if B % cand:
            continue                               # keep blocks exact (no ragged tail)
        if cand * per_image > block_cap:
            continue                               # block must fit the per-step VMEM budget
        if B > 1 and B // cand < 2:
            continue                               # keep >=2 grid steps so both v7x TCs work
        bt = cand
    # TODO(synk): if even a single image exceeds block_cap, split HW across grid steps.

    kernel = functools.partial(_se_kernel, hw=HW, fold=fold)

    out3 = pl.pallas_call(
        kernel,
        out_shape=jax.ShapeDtypeStruct((B, Cg, L), x.dtype),
        grid=(B // bt,),
        in_specs=[
            pl.BlockSpec((bt, Cg, L), lambda i: (i, 0, 0)),          # activation slab
            pl.BlockSpec((fold, Cg, hidden), lambda i: (0, 0, 0)),   # W1^T (folded order)
            pl.BlockSpec((1, hidden), lambda i: (0, 0)),             # b1 (row)
            pl.BlockSpec((fold, Cg, hidden), lambda i: (0, 0, 0)),   # W2 (folded order)
            pl.BlockSpec((fold, Cg, 1), lambda i: (0, 0, 0)),        # b2 (folded order)
        ],
        out_specs=pl.BlockSpec((bt, Cg, L), lambda i: (i, 0, 0)),
        compiler_params=pltpu.CompilerParams(
            dimension_semantics=("parallel",),     # batch tiles shard across TCs (v7x)
            vmem_limit_bytes=vmem_limit,
        ),
    )(x3, w1t_p, b1r, w2_p, b2_p)

    return out3.reshape(B, C, H, W)


def _se_ref(x, w1, b1, w2, b2):
    y = jnp.mean(x.astype(jnp.float32), axis=(2, 3))                 # (B, C)
    h = jnp.maximum(y @ w1.T.astype(jnp.float32) + b1, 0.0)          # (B, hidden)
    s = h @ w2.T.astype(jnp.float32) + b2                            # (B, C)
    gate = jnp.clip(s + 3.0, 0.0, 6.0) / 6.0
    return (x.astype(jnp.float32) * gate[:, :, None, None]).astype(x.dtype)


if __name__ == "__main__":
    master = jax.random.PRNGKey(0)

    def run_case(key, B, C, H, W, dtype, reduction=4, tol=1e-5):
        hidden = _make_divisible(C // reduction, 8)
        k1, k2, k3, k4, k5 = jax.random.split(key, 5)
        x = (jax.random.normal(k1, (B, C, H, W), dtype=jnp.float32) * 2.0).astype(dtype)
        w1 = jax.random.normal(k2, (hidden, C), dtype=jnp.float32) * 0.5
        b1 = jax.random.normal(k3, (hidden,), dtype=jnp.float32) * 0.1
        w2 = jax.random.normal(k4, (C, hidden), dtype=jnp.float32) * 0.5
        b2 = jax.random.normal(k5, (C,), dtype=jnp.float32) * 0.1

        out = jax.block_until_ready(se_layer(x, w1, b1, w2, b2))
        ref = _se_ref(x, w1, b1, w2, b2)

        assert out.shape == x.shape and out.dtype == x.dtype
        assert jnp.allclose(out.astype(jnp.float32), ref.astype(jnp.float32),
                            atol=tol, rtol=tol), f"mismatch B={B} C={C} H={H} W={W} {dtype}"

    keys = jax.random.split(master, 4)
    run_case(keys[0], 2, 4, 16, 16, jnp.float32)              # HW=256 already lane-dense, fold=1
    run_case(keys[1], 8, 16, 8, 8, jnp.float32)               # HW=64  -> fold=2, batch tile 4
    run_case(keys[2], 4, 32, 4, 4, jnp.float32)               # HW=16  -> fold=8, batch tile 2
    run_case(keys[3], 4, 16, 8, 8, jnp.bfloat16, tol=3e-2)    # bf16: f32 pooling acc, bf16 gate

    print("KERNEL_OK")
</pallas_src>

<mosaic_0001>
module attributes {stable_mosaic.version = 11 : i64} {
  func.func @_se_kernel(%arg0: i32, %arg1: memref<1x4x256xf32, #tpu.memory_space<vmem>>, %arg2: memref<1x4x8xf32, #tpu.memory_space<vmem>>, %arg3: memref<1x8xf32, #tpu.memory_space<vmem>>, %arg4: memref<1x4x8xf32, #tpu.memory_space<vmem>>, %arg5: memref<1x4x1xf32, #tpu.memory_space<vmem>>, %arg6: memref<1x4x256xf32, #tpu.memory_space<vmem>>) attributes {dimension_semantics = [#tpu.dimension_semantics<parallel>], iteration_bounds = array<i64: 2>, scalar_prefetch = 0 : i64, scratch_operands = 0 : i64, tpu.core_type = #tpu.core_type<tc>, window_params = [{transform_indices = @transform_0, window_bounds = array<i64: 1, 4, 256>}, {pipeline_mode = #tpu.pipeline_mode<synchronous>, transform_indices = @transform_1, window_bounds = array<i64: 1, 4, 8>}, {pipeline_mode = #tpu.pipeline_mode<synchronous>, transform_indices = @transform_2, window_bounds = array<i64: 1, 8>}, {pipeline_mode = #tpu.pipeline_mode<synchronous>, transform_indices = @transform_3, window_bounds = array<i64: 1, 4, 8>}, {pipeline_mode = #tpu.pipeline_mode<synchronous>, transform_indices = @transform_4, window_bounds = array<i64: 1, 4, 1>}, {transform_indices = @transform_5, window_bounds = array<i64: 1, 4, 256>}]} {
    %c0 = arith.constant 0 : index
    %c0_0 = arith.constant 0 : index
    %c0_1 = arith.constant 0 : index
    %0 = vector.load %arg1[%c0, %c0_0, %c0_1] : memref<1x4x256xf32, #tpu.memory_space<vmem>>, vector<1x4x256xf32>
    %cst = arith.constant dense<0.000000e+00> : vector<1x4xf32>
    %1 = vector.multi_reduction <add>, %0, %cst [2] : vector<1x4x256xf32> to vector<1x4xf32>
    %2 = vector.shape_cast %1 : vector<1x4xf32> to vector<1x4x1xf32>
    %cst_2 = arith.constant 3.906250e-03 : f32
    %3 = vector.broadcast %cst_2 : f32 to vector<1x4x1xf32>
    %4 = arith.mulf %2, %3 : vector<1x4x1xf32>
    %c0_3 = arith.constant 0 : index
    %c0_4 = arith.constant 0 : index
    %5 = vector.load %arg3[%c0_3, %c0_4] : memref<1x8xf32, #tpu.memory_space<vmem>>, vector<1x8xf32>
    %c0_5 = arith.constant 0 : index
    %c0_6 = arith.constant 0 : index
    %c0_7 = arith.constant 0 : index
    %6 = vector.load %arg2[%c0_5, %c0_6, %c0_7] : memref<1x4x8xf32, #tpu.memory_space<vmem>>, vector<1x4x8xf32>
    %7 = vector.shape_cast %6 : vector<1x4x8xf32> to vector<4x8xf32>
    %8 = vector.shape_cast %7 : vector<4x8xf32> to vector<1x4x8xf32>
    %9 = vector.broadcast %4 : vector<1x4x1xf32> to vector<1x4x8xf32>
    %10 = arith.mulf %8, %9 : vector<1x4x8xf32>
    %cst_8 = arith.constant dense<0.000000e+00> : vector<1x8xf32>
    %11 = vector.multi_reduction <add>, %10, %cst_8 [1] : vector<1x4x8xf32> to vector<1x8xf32>
    %12 = vector.shape_cast %11 : vector<1x8xf32> to vector<1x1x8xf32>
    %13 = vector.shape_cast %5 : vector<1x8xf32> to vector<1x1x8xf32>
    %14 = arith.addf %13, %12 : vector<1x1x8xf32>
    %cst_9 = arith.constant 0.000000e+00 : f32
    %15 = vector.broadcast %cst_9 : f32 to vector<1x1x8xf32>
    %16 = arith.maximumf %14, %15 : vector<1x1x8xf32>
    %c0_10 = arith.constant 0 : index
    %c0_11 = arith.constant 0 : index
    %c0_12 = arith.constant 0 : index
    %17 = vector.load %arg4[%c0_10, %c0_11, %c0_12] : memref<1x4x8xf32, #tpu.memory_space<vmem>>, vector<1x4x8xf32>
    %18 = vector.shape_cast %17 : vector<1x4x8xf32> to vector<4x8xf32>
    %19 = vector.shape_cast %18 : vector<4x8xf32> to vector<1x4x8xf32>
    %20 = vector.broadcast %16 : vector<1x1x8xf32> to vector<1x4x8xf32>
    %21 = arith.mulf %19, %20 : vector<1x4x8xf32>
    %cst_13 = arith.constant dense<0.000000e+00> : vector<1x4xf32>
    %22 = vector.multi_reduction <add>, %21, %cst_13 [2] : vector<1x4x8xf32> to vector<1x4xf32>
    %23 = vector.shape_cast %22 : vector<1x4xf32> to vector<1x4x1xf32>
    %c0_14 = arith.constant 0 : index
    %c0_15 = arith.constant 0 : index
    %c0_16 = arith.constant 0 : index
    %24 = vector.load %arg5[%c0_14, %c0_15, %c0_16] : memref<1x4x1xf32, #tpu.memory_space<vmem>>, vector<1x4x1xf32>
    %25 = vector.shape_cast %24 : vector<1x4x1xf32> to vector<4x1xf32>
    %26 = vector.shape_cast %25 : vector<4x1xf32> to vector<1x4x1xf32>
    %27 = arith.addf %23, %26 : vector<1x4x1xf32>
    %cst_17 = arith.constant 3.000000e+00 : f32
    %28 = vector.broadcast %cst_17 : f32 to vector<1x4x1xf32>
    %29 = arith.addf %27, %28 : vector<1x4x1xf32>
    %cst_18 = arith.constant 0.000000e+00 : f32
    %cst_19 = arith.constant 6.000000e+00 : f32
    %30 = vector.broadcast %cst_18 : f32 to vector<1x4x1xf32>
    %31 = arith.maximumf %30, %29 : vector<1x4x1xf32>
    %32 = vector.broadcast %cst_19 : f32 to vector<1x4x1xf32>
    %33 = arith.minimumf %32, %31 : vector<1x4x1xf32>
    %cst_20 = arith.constant 0.166666672 : f32
    %34 = vector.broadcast %cst_20 : f32 to vector<1x4x1xf32>
    %35 = arith.mulf %33, %34 : vector<1x4x1xf32>
    %c0_21 = arith.constant 0 : index
    %c0_22 = arith.constant 0 : index
    %c0_23 = arith.constant 0 : index
    %36 = vector.load %arg1[%c0_21, %c0_22, %c0_23] : memref<1x4x256xf32, #tpu.memory_space<vmem>>, vector<1x4x256xf32>
    %37 = vector.broadcast %35 : vector<1x4x1xf32> to vector<1x4x256xf32>
    %38 = arith.mulf %36, %37 : vector<1x4x256xf32>
    %c0_24 = arith.constant 0 : index
    %c0_25 = arith.constant 0 : index
    %c0_26 = arith.constant 0 : index
    %39 = vector.load %arg6[%c0_24, %c0_25, %c0_26] : memref<1x4x256xf32, #tpu.memory_space<vmem>>, vector<1x4x256xf32>
    tpu.vector_store %arg6[%c0_24, %c0_25, %c0_26], %38 {strides = array<i32>} : memref<1x4x256xf32, #tpu.memory_space<vmem>>, vector<1x4x256xf32>,
    return
  }
  func.func @transform_0(%arg0: i32) -> (i32, i32, i32) {
    %c0_i32 = arith.constant 0 : i32
    %c0_i32_0 = arith.constant 0 : i32
    %c0_i32_1 = arith.constant 0 : i32
    return %arg0, %c0_i32, %c0_i32_0 : i32, i32, i32
  }
  func.func @transform_1(%arg0: i32) -> (i32, i32, i32) {
    %c0_i32 = arith.constant 0 : i32
    %c0_i32_0 = arith.constant 0 : i32
    %c0_i32_1 = arith.constant 0 : i32
    %c0_i32_2 = arith.constant 0 : i32
    return %c0_i32, %c0_i32_0, %c0_i32_1 : i32, i32, i32
  }
  func.func @transform_2(%arg0: i32) -> (i32, i32) {
    %c0_i32 = arith.constant 0 : i32
    %c0_i32_0 = arith.constant 0 : i32
    %c0_i32_1 = arith.constant 0 : i32
    return %c0_i32, %c0_i32_0 : i32, i32
  }
  func.func @transform_3(%arg0: i32) -> (i32, i32, i32) {
    %c0_i32 = arith.constant 0 : i32
    %c0_i32_0 = arith.constant 0 : i32
    %c0_i32_1 = arith.constant 0 : i32
    %c0_i32_2 = arith.constant 0 : i32
    return %c0_i32, %c0_i32_0, %c0_i32_1 : i32, i32, i32
  }
  func.func @transform_4(%arg0: i32) -> (i32, i32, i32) {
    %c0_i32 = arith.constant 0 : i32
    %c0_i32_0 = arith.constant 0 : i32
    %c0_i32_1 = arith.constant 0 : i32
    %c0_i32_2 = arith.constant 0 : i32
    return %c0_i32, %c0_i32_0, %c0_i32_1 : i32, i32, i32
  }
  func.func @transform_5(%arg0: i32) -> (i32, i32, i32) {
    %c0_i32 = arith.constant 0 : i32
    %c0_i32_0 = arith.constant 0 : i32
    %c0_i32_1 = arith.constant 0 : i32
    return %arg0, %c0_i32, %c0_i32_0 : i32, i32, i32
  }
}

</mosaic_0001>

<bundles_post_ra>
// kernel: tpu_custom_call.1
= control target key start
LH: loop header
LB: loop body
LE: loop exit
PB: predicated region body
PF: predicated region fallthrough
CT: control target
= control target key end

     0   :  { %10 = vsyncpa [#allocation3], 0  ;;  %s759_s0 = inlined_call_operand.hbm [shape: f32[2,4,256], index: 0, kind: input, shape index: {}]   ;;  %s760_s1 = inlined_call_operand.vmem [shape: f32[1,4,8], index: 1, kind: input, shape index: {}]   ;;  %s761_s2 = inlined_call_operand.vmem [shape: f32[1,8], index: 2, kind: input, shape index: {}]   ;;  %s762_s3 = inlined_call_operand.vmem [shape: f32[1,4,8], index: 3, kind: input, shape index: {}]   ;;  %s763_s4 = inlined_call_operand.vmem [shape: f32[1,4,1], index: 4, kind: input, shape index: {}]   ;;  %s764_s5 = inlined_call_operand.hbm [shape: f32[2,4,256], index: 5, kind: output, shape index: {}]  }
   0x1   :  { %12 = vsyncpa [#allocation3 + $0x1], 0 }
   0x2   :  { %13 = vsyncpa [#allocation4], 0 }
   0x3   :  { %15 = vsyncpa [#allocation4 + $0x1], 0  ;;  %s580_s18 = smov 0   ;;  %s582_s19 = smov 0  }
   0x4   :  { %s584_s20 = smov 0   ;;  %s586_s21 = smov 0  }
   0x5 LB: > { %s601_s22 = sadd.s32 4294967295, %s544_s21   ;;  %s381_s23 = sadd.s32 4294967294, %s544_s21   ;;  %s544_s21 = sphi %s586_s21, %s779_s21   ;;  %s540_s20 = sphi %s584_s20, %s778_s20   ;;  %s536_s19 = sphi %s582_s19, %s777_s19   ;;  %s532_s18 = sphi %s580_s18, %s776_s18  }
   0x6   : > { %s605_s24 = sadd.s32 1, %s544_s21   ;;  %s28_s25 = sadd.s32 1, %s540_s20 }
   0x7   : > { %s25_s26 = ssub.s32 %s544_s21, %s605_s24  ;;  %p35_p0 = scmp.ne.s32.totalorder %s540_s20, %s536_s19 }
   0x8   : > { %p26_p1 = scmp.eq.s32.totalorder %s25_s26, 0  ;;  %p36_p2 = scmp.eq.s32.totalorder %s544_s21, 0 }
   0x9   : > { %p41_p3 = scmp.ne.s32.totalorder %s536_s19, %s532_s18  ;;  %p42_p4 = scmp.eq.s32.totalorder %s601_s22, 0 }
   0xa   : > { %s617_s27 = scalar_select %p26_p1, %s540_s20, %s28_s25  }
   0xb   : > { %p619_p5 = por %p36_p2, %p35_p0  ;;  %p623_p6 = por %p42_p4, %p41_p3 }
   0xc   : > { %p149_p7 = scmp.eq.s32.totalorder %s601_s22, 1  ;;  %p155_p8 = scmp.eq.s32.totalorder %s381_s23, 1 }
   0xd   : > { %p409_p10 = scmp.lt.s32.totalorder %s544_s21, 2  ;;  %s187_s7 = sand.u32 1, %s540_s20  }
   0xe   : > { %p630_p11 = por %p149_p7, %p35_p0  ;;  %p634_p12 = por %p155_p8, %p41_p3 }
   0xf   : > { %s395_s8 = sshll.u32 %s544_s21, 7  ;;  %s384_s9 = sshll.u32 %s187_s7, 3 }
  0x10   : > { %s768_s30 = scalar_select %p630_p11, 1, 0 }
  0x11   : > { %s769_s6 = scalar_select %p634_p12, 1, 0 }
  0x12   : > { %s643_s12 = scalar_lea.hbm %s759_s0, %s395_s8  ;;  %s191_s13 = scalar_lea.vmem [#allocation2], %s384_s9 }
  0x13   : > { %s199_s14 = sshll.u32 %s191_s13, 4  ;;  %p647_p13 = pnand %p409_p10, %p619_p5  ;;  %s651_s14 = int_to_ptr.vmem [resolvable:$true] %s199_s14 }
  0x14   : > { %s188_s16 = scalar_lea.sflag [#allocation3], %s187_s7  ;;  %s448_s17 = scalar_lea.hbm %s643_s12, 128 }
  0x15   : > { %p449_p2 = scmp.ne.s32.totalorder %s643_s12, %s448_s17  ;;  %p450_p3 = pneg %p647_p13 }
  0x16   : > { %s453_s26 = scalar_lea.hbm %s759_s0, 256  ;;  %p454_p5 = scmp.lt.u32.totalorder %s643_s12, %s759_s0 }
  0x17   : > { %p451_p4 = pnand %p450_p3, %p449_p2  ;;  %p455_p8 = scmp.lt.u32.totalorder %s453_s26, %s448_s17 }
  0x18   : > { %p457_p9 = scmp.lt.u32.totalorder %s448_s17, %s643_s12 }
  0x19   : > { %p452_p7 = pneg %p451_p4  ;;  %p456_p10 = por %p455_p8, %p454_p5 }
  0x1b   : > { %p458_p0 = por %p457_p9, %p456_p10 }
  0x1d   : > { %p459_p1 = pnand %p458_p0, %p452_p7 }
  0x1f   : > { %462 = shalt.err (!%p459_p1)
}
  0x20   : > { %s463_s7 = scalar_lea.vmem %s651_s14, 128  ;;  %s546_s9 = smov [#allocation2]  }
  0x21   : > { %p464_p2 = scmp.ne.s32.totalorder %s651_s14, %s463_s7  ;;  %s468_s10 = sshll.u32 %s546_s9, 4  ;;  %s469_s10 = int_to_ptr.vmem [resolvable:$false] %s468_s10 }
  0x22   : > { %s470_s11 = scalar_lea.vmem %s469_s10, 256  ;;  %p471_p11 = scmp.lt.s32.totalorder %s651_s14, %s469_s10 }
  0x23   : > { %p466_p4 = pnand %p464_p2, %p450_p3  ;;  %p472_p5 = scmp.lt.s32.totalorder %s470_s11, %s463_s7 }
  0x25   : > { %p467_p12 = pneg %p466_p4  ;;  %p473_p8 = por %p472_p5, %p471_p11 }
  0x27   : > { %p474_p9 = pnand %p473_p8, %p467_p12 }
  0x29   : > { %477 = shalt.err (!%p474_p9)
}
  0x2a   : > { %404 = dma.hbm_to_vmem [thread:$0]  (!%p647_p13), %s643_s12, 128, %s651_s14, %s188_s16  }
  0x2b   : > { %p771_p0 = scmp.lt.s32.totalorder %s544_s21, 3  ;;  %p772_p1 = scmp.ge.s32.totalorder %s544_s21, 1 }
  0x2d   : > { %p205_p3 = pnand %p772_p1, %p771_p0 }
  0x2e   : > { %s685_s13 = sand.u32 (!%p205_p3), 1, %s536_s19  }
  0x2f   : > { %208 = sbr.rel (%p205_p3) target bundleno = 527 (0x20f), region = 40  ;;  %s388_s17 = sshll.u32 (!%p205_p3), %s685_s13, 3 }
  0x30   : > { %s211_s23 = scalar_lea.sflag (!%p205_p3), [#allocation3], %s685_s13  ;;  %s214_s15 = scalar_lea.vmem (!%p205_p3), [#allocation2], %s388_s17 }
  0x36   : > { %523 = dma.done.wait (%p623_p6), %s211_s23, 128  }
  0x37   : > { %525 = vsyncadd (%p623_p6), %s211_s23, 4294967168  ;;  %vm245_vm0 = vcmask 1043456   ;;  %v241_v0 = vld [vmem:[%s214_s15] sm:$0xff]  ;;  %vm255_vm1 = vcmask 60416   ;;  %v267_v13 = vlaneseq  ;;  %v547_v26 = vmov 0   ;;  %s396_s7 = sshll.u32 %s601_s22, 7 }
  0x38   : > { %v243_v1 = vcombine.high %v241_v0, %v241_v0  ;;  %v246_v2 = vsel %vm245_vm0, %v241_v0, 0.0  ;;  %v253_v5 = vld [vmem:[%s760_s1] sm:$0xf]  ;;  %445 = vset.pattern.permute.xlu1 %v547_v26  ;;  %446 = vset.pattern.permute.xlu0 %v547_v26  ;;  %v548_v34 = vmov 839922192   ;;  %s240_s9 = scalar_lea.vmem [#allocation5], %s388_s17  ;;  %s715_s15 = scalar_lea.hbm %s764_s5, %s396_s7 }
  0x39   : > { %v268_v16 = vshrl.u32 %v267_v13, 7  ;;  %v252_v17 = vld [vmem:[%s761_s2] sm:$0x1]  ;;  %v287_v35 = vunpack.c.l.s4 %v548_v34  ;;  %s311_s10 = sshll.u32 %s240_s9, 4  ;;  %s297_s12 = scalar_lea.sflag [#allocation4], %s685_s13  ;;  %s717_s10 = int_to_ptr.vmem [resolvable:$true] %s311_s10 }
  0x3a   : > { %v247_v3 = vsel %vm245_vm0, %v243_v1, 0.0  ;;  %v265_v22 = vld [vmem:[%s762_s3] sm:$0xf]  ;;  %s478_s14 = scalar_lea.vmem %s717_s10, 128  ;;  %p773_p11 = scmp.ne.s32.totalorder %s768_s30, 0 }
  0x3b   : > { %v248_v4 = vadd.f32 %v247_v3, %v246_v2  ;;  %v269_v20 = vsub.s32 0, %v268_v16  ;;  %v276_v27 = vld [vmem:[%s763_s4] sm:$0xf]  ;;  %v288_v36 = vunpack.c.0.s8 %v287_v35  ;;  %p479_p6 = scmp.ne.s32.totalorder %s717_s10, %s478_s14  ;;  %s549_s22 = smov [#allocation5]  }
  0x3c   : > { %s482_s17 = sshll.u32 %s549_s22, 4  ;;  %s483_s17 = int_to_ptr.vmem [resolvable:$false] %s482_s17 }
  0x3d   : > { %249 = vadd.xlane.f32.xlu0 %v248_v4  ;;  %v291_v37 = vsub.s32 %v288_v36, %v268_v16  ;;  %p480_p12 = pnand %p479_p6, %p773_p11  ;;  %s484_s29 = scalar_lea.vmem %s483_s17, 256 }
  0x3e   : > { %p485_p7 = scmp.lt.s32.totalorder %s717_s10, %s483_s17  ;;  %p486_p10 = scmp.lt.s32.totalorder %s484_s29, %s478_s14 }
  0x3f   : > { %p481_p13 = pneg %p480_p12 }
  0x40   : > { %p487_p2 = por %p486_p10, %p485_p7 }
  0x42   : > { %p488_p4 = pnand %p487_p2, %p481_p13 }
  0xca   : > { %v250_v6 = vpop.xlane.xlu0 %249 }
  0xcb   : > { %v251_v7 = vmul.f32 0.00390625, %v250_v6 }
  0xcd   : > { %v254_v8 = vmul.f32 %v253_v5, %v251_v7 }
  0xcf   : > { %v256_v9 = vsel %vm255_vm1, %v254_v8, 0.0 }
  0xd0   : > { %v257_v10 = vrot.slane %v256_v9, 4 }
  0xd2   : > { %v258_v11 = vadd.f32 %v257_v10, %v256_v9 }
  0xd4   : > { %v259_v12 = vrot.slane %v258_v11, 2 }
  0xd6   : > { %v260_v14 = vadd.f32 %v259_v12, %v258_v11 }
  0xd8   : > { %v261_v15 = vrot.slane %v260_v14, 1 }
  0xda   : > { %v262_v18 = vadd.f32 %v261_v15, %v260_v14 }
  0xdc   : > { %v263_v19 = vadd.f32 %v262_v18, %v252_v17 }
  0xde   : > { %v264_v21 = vmax.f32 %v263_v19, 0.0 }
  0xe0   : > { %v270_v23 = vrot.slane %v264_v21, %v269_v20 }
  0xe2   : > { %v272_v24 = vmul.f32 %v270_v23, %v265_v22 }
  0xe4   : > { %v273_v25 = vsel %vm255_vm1, %v272_v24, 0.0 }
  0xe5   : > { %274 = vadd.xlane.f32.xlu0 %v273_v25 }
 0x172   : > { %v275_v28 = vpop.xlane.xlu0 %274 }
 0x173   : > { %v277_v29 = vadd.f32 %v276_v27, %v275_v28 }
 0x175   : > { %v278_v30 = vadd.f32 3.0, %v277_v29 }
 0x177   : > { %v279_v31 = vmax.f32 %v278_v30, 0.0 }
 0x179   : > { %v280_v32 = vmin.f32 %v279_v31, 6.0 }
 0x17b   : > { %v281_v33 = vmul.f32 0.16666667, %v280_v32 }
 0x17d   : > { %284 = vperm.xlu1 %445, %v281_v33  }
 0x1fc   : > { %v285_v38 = vpop.permute.xlu1 %284 }
 0x1fd   : > { %v292_v39 = vrot.slane %v285_v38, %v291_v37 }
 0x1ff   : > { %v294_v40 = vmul.f32 %v292_v39, %v241_v0 }
 0x201   : > { %295 = vst [vmem:[%s240_s9] sm:$0xff] %v294_v40 }
 0x202   : > { %491 = shalt.err (!%p488_p4)
}
 0x203   : > { %s492_s13 = scalar_lea.hbm %s715_s15, 128  ;;  %s496_s26 = scalar_lea.hbm %s764_s5, 256 }
 0x204   : > { %p493_p5 = scmp.ne.s32.totalorder %s715_s15, %s492_s13  ;;  %p497_p0 = scmp.lt.u32.totalorder %s715_s15, %s764_s5 }
 0x205   : > { %p498_p1 = scmp.lt.u32.totalorder %s496_s26, %s492_s13  ;;  %p500_p6 = scmp.lt.u32.totalorder %s492_s13, %s715_s15 }
 0x206   : > { %p494_p8 = pnand %p493_p5, %p773_p11 }
 0x207   : > { %p499_p3 = por %p498_p1, %p497_p0 }
 0x208   : > { %p495_p9 = pneg %p494_p8 }
 0x209   : > { %p501_p12 = por %p500_p6, %p499_p3 }
 0x20b   : > { %p502_p13 = pnand %p501_p12, %p495_p9 }
 0x20d   : > { %505 = shalt.err (!%p502_p13)
}
 0x20e   : > { %399 = dma.vmem_to_hbm [thread:$0]  (%p773_p11), %s717_s10, 128, %s715_s15, %s297_s12  }
 0x20f PF: > { %s323_s7 = sand.u32 1, %s532_s18   ;;  %p774_p7 = scmp.ne.s32.totalorder %s769_s6, 0 }
 0x210   : > { %p775_p10 = scmp.ge.s32.totalorder %s544_s21, 2  ;;  %s324_s9 = scalar_lea.sflag [#allocation4], %s323_s7 }
 0x212   : > { %p406_p2 = pnand %p775_p10, %p774_p7 }
 0x214   : > { %527 = dma.done.wait (!%p406_p2), %s324_s9, 128  }
 0x215   : > { %529 = vsyncadd (!%p406_p2), %s324_s9, 4294967168  ;;  %p18_p4 = scmp.ge.s32.totalorder %s605_s24, 4   ;;  %s776_s18 = smov %s536_s19 }
 0x216   : > { %s777_s19 = smov %s540_s20  ;;  %s778_s20 = smov %s617_s27 }
 0x217   : > { %s779_s21 = smov %s605_s24  ;;  %20 = sbr.rel (!%p18_p4) target bundleno = 5 (0x5), region = 85 }
 0x21e   :  { %329 = vsyncpa [#allocation3], 1 }
 0x21f   :  { %331 = vsyncpa [#allocation3 + $0x1], 1 }
 0x220   :  { %332 = vsyncpa [#allocation4], 1 }
 0x221   :  { %334 = vsyncpa [#allocation4 + $0x1], 1 }

</bundles_post_ra>
